<compile_context>
chip_gen: v6e
topology: v6e:2x2x1
jax: 0.10.0
libtpu: 0.0.40
codegen_flags: <defaults>
</compile_context>

<pallas_src>
import functools

import jax
import jax.numpy as jnp
from jax.experimental import pallas as pl
from jax.experimental.pallas import tpu as pltpu


def _contrastive_kernel(n_ref, o1_ref, o2_ref, t_ref, out_ref, *,
                        margin, eps, tb):
    # n_ref:   (1,)      int32   SMEM  -- number of valid rows (real batch B)
    # o1_ref:  (TB, D)   native  VMEM
    # o2_ref:  (TB, D)   native  VMEM
    # t_ref:   (TB, 1)   native  VMEM
    # out_ref: (8, 128)  float32 VMEM  -- per-tile partial sum at [0,0], 0 else
    o1 = o1_ref[...].astype(jnp.float32)
    o2 = o2_ref[...].astype(jnp.float32)
    diff = o2 - o1
    distances = jnp.sum(diff * diff, axis=1, keepdims=True)          # (TB, 1)
    t = t_ref[...].astype(jnp.float32)                               # (TB, 1)
    hinge = jnp.maximum(margin - jnp.sqrt(distances + eps), 0.0)     # relu(...)
    losses = 0.5 * (t * distances + (1.0 - t) * (hinge * hinge))     # (TB, 1)

    i = pl.program_id(0)
    last = pl.num_programs(0) - 1

    def _write(s):
        # Single non-zero element at [0, 0]: host-side reduce is a dense sum.
        r = jax.lax.broadcasted_iota(jnp.int32, (8, 128), 0)
        c = jax.lax.broadcasted_iota(jnp.int32, (8, 128), 1)
        out_ref[...] = jnp.where((r + c) == 0, s, 0.0)

    @pl.when(i < last)
    def _():  # interior tiles: all rows valid, no masking
        _write(jnp.sum(losses))

    @pl.when(i == last)
    def _():  # last tile may be ragged / padded: mask rows >= B
        row = jax.lax.broadcasted_iota(jnp.int32, losses.shape, 0)
        valid = n_ref[0] - i * tb
        _write(jnp.sum(jnp.where(row < valid, losses, 0.0)))


def _round_up8(x):
    return ((int(x) + 7) // 8) * 8


def _choose_config(batch, dim, in_itemsize):
    """Pick (tb, grid, vmem_limit_bytes, triple_buffer) sized by bytes."""
    # ---- generation-aware VMEM budget -------------------------------------
    cap = 64 << 20                                  # conservative (v7x per-TC)
    try:
        info = pltpu.get_tpu_info()
        cap = int(getattr(info, "vmem_capacity_bytes", cap)) or cap
    except Exception:
        pass
    # Accounted budget (inputs + target + intermediates); leave headroom for
    # Mosaic internal scratch via vmem_limit_bytes.
    budget = min(56 << 20, (cap * 5) // 8)          # v5e/v6e: 56 MiB, v7x: 40 MiB
    vmem_limit = min((cap * 3) // 4, budget + (24 << 20))   # 80 MiB / 48 MiB

    # ---- per-row VMEM cost (bytes) ----------------------------------------
    n_buf = 2
    per_row = (2 * n_buf * dim * in_itemsize        # o1 + o2 pipelined buffers
               + 4 * dim * 4                        # (TB, D) f32 temporaries
               + n_buf * 512                        # lane-padded (TB,1) target bufs
               + 6 * 512)                           # (TB,1) f32 tail temporaries
    tb = max(8, (budget // per_row) // 8 * 8)

    bp = _round_up8(batch)                          # padded batch (8-multiple)
    tb = min(tb, bp)

    # ---- keep >= 2 grid steps when it's free (v7x megacore) ----------------
    # Only split if each step still streams >= ~1 MiB per input.
    min_rows = _round_up8(max(8, -(-(1 << 20) // max(1, dim * in_itemsize))))
    for k in (8, 4, 2):
        rows_k = _round_up8(-(-batch // k))
        if rows_k >= min_rows:
            tb = min(tb, rows_k)
            break

    grid = pl.cdiv(batch, tb)
    tile_in_bytes = tb * dim * in_itemsize
    triple_buffer = (tile_in_bytes < (1 << 20)) and grid >= 4
    return tb, grid, int(vmem_limit), triple_buffer


def contrastive_loss(output1, output2, target, *, margin, eps=1e-9,
                     size_average=True):
    """Pallas port of ContrastiveLoss.forward (returns scalar float32)."""
    B, D = output1.shape
    t2 = target.reshape(B, 1)                   # stream target in native dtype

    in_itemsize = jnp.dtype(output1.dtype).itemsize
    tb, grid, vmem_limit, triple_buffer = _choose_config(B, D, in_itemsize)
    n_valid = jnp.array([B], dtype=jnp.int32)   # SMEM scalar (no baked-in B)

    kernel = functools.partial(_contrastive_kernel, margin=float(margin),
                               eps=float(eps), tb=tb)

    if triple_buffer:
        big_spec = pl.BlockSpec((tb, D), lambda i: (i, 0),
                                pipeline_mode=pl.Buffered(3))
    else:
        big_spec = pl.BlockSpec((tb, D), lambda i: (i, 0))

    partials = pl.pallas_call(
        kernel,
        out_shape=jax.ShapeDtypeStruct((grid * 8, 128), jnp.float32),
        grid=(grid,),
        in_specs=[
            pl.BlockSpec(memory_space=pltpu.SMEM),        # n_valid (whole, SMEM)
            big_spec,                                     # output1 batch tile
            big_spec,                                     # output2 batch tile
            pl.BlockSpec((tb, 1), lambda i: (i, 0)),      # target batch tile
        ],
        out_specs=pl.BlockSpec((8, 128), lambda i: (i, 0)),
        compiler_params=pltpu.CompilerParams(
            dimension_semantics=("parallel",),            # megacore on v7x
            vmem_limit_bytes=vmem_limit),
        cost_estimate=pl.CostEstimate(
            flops=int(3 * B * D + 10 * B),
            transcendentals=int(B),
            bytes_accessed=int(2 * B * D * in_itemsize
                               + B * jnp.dtype(target.dtype).itemsize
                               + grid * 8 * 128 * 4)),
    )(n_valid, output1, output2, t2)

    # Each (8,128) block has exactly one non-zero element -> dense reduce.
    total = jnp.sum(partials)
    if size_average:
        return total / B
    # TODO(synk): PyTorch source returns the unbound `losses.sum` method here
    # (a bug); we return the actual sum.
    return total


def _reference(output1, output2, target, margin, eps=1e-9):
    # pure-JAX reference mirroring the PyTorch math
    distances = jnp.sum((output2 - output1) ** 2, axis=1)
    t = target.astype(jnp.float32)
    losses = 0.5 * (t * distances +
                    (1.0 - t) * jnp.maximum(margin - jnp.sqrt(distances + eps),
                                            0.0) ** 2)
    return jnp.mean(losses)


if __name__ == "__main__":
    margin = 1.0
    B, D = 2, 32  # small shapes: batch=2, hidden=32

    key = jax.random.PRNGKey(0)
    k1, k2, k3 = jax.random.split(key, 3)
    output1 = jax.random.normal(k1, (B, D), dtype=jnp.float32)
    output2 = jax.random.normal(k2, (B, D), dtype=jnp.float32)
    target = jax.random.bernoulli(k3, 0.5, (B,)).astype(jnp.int32)

    loss = contrastive_loss(output1, output2, target, margin=margin)
    loss = jax.block_until_ready(loss)

    ref = _reference(output1, output2, target, margin)
    assert jnp.allclose(loss, ref, rtol=1e-5, atol=1e-6), (loss, ref)
    print("KERNEL_OK")
</pallas_src>

<mosaic_0001>
module attributes {stable_mosaic.version = 11 : i64} {
  func.func @_contrastive_kernel(%arg0: i32, %arg1: memref<1xi32, #tpu.memory_space<smem>>, %arg2: memref<8x32xf32, #tpu.memory_space<vmem>>, %arg3: memref<8x32xf32, #tpu.memory_space<vmem>>, %arg4: memref<8x1xi32, #tpu.memory_space<vmem>>, %arg5: memref<8x128xf32, #tpu.memory_space<vmem>>) attributes {dimension_semantics = [#tpu.dimension_semantics<parallel>], iteration_bounds = array<i64: 1>, scalar_prefetch = 0 : i64, scratch_operands = 0 : i64, tpu.core_type = #tpu.core_type<tc>, window_params = [{transform_indices = @transform_0, window_bounds = array<i64: 1>}, {transform_indices = @transform_1, window_bounds = array<i64: 8, 32>}, {transform_indices = @transform_2, window_bounds = array<i64: 8, 32>}, {transform_indices = @transform_3, window_bounds = array<i64: 8, 1>}, {transform_indices = @transform_4, window_bounds = array<i64: 8, 128>}]} {
    %c0 = arith.constant 0 : index
    %c0_0 = arith.constant 0 : index
    %0 = vector.load %arg2[%c0, %c0_0] : memref<8x32xf32, #tpu.memory_space<vmem>>, vector<8x32xf32>
    %c0_1 = arith.constant 0 : index
    %c0_2 = arith.constant 0 : index
    %1 = vector.load %arg3[%c0_1, %c0_2] : memref<8x32xf32, #tpu.memory_space<vmem>>, vector<8x32xf32>
    %2 = arith.subf %1, %0 : vector<8x32xf32>
    %3 = arith.mulf %2, %2 : vector<8x32xf32>
    %cst = arith.constant dense<0.000000e+00> : vector<8xf32>
    %4 = vector.multi_reduction <add>, %3, %cst [1] : vector<8x32xf32> to vector<8xf32>
    %5 = vector.shape_cast %4 : vector<8xf32> to vector<8x1xf32>
    %c0_3 = arith.constant 0 : index
    %c0_4 = arith.constant 0 : index
    %6 = vector.load %arg4[%c0_3, %c0_4] : memref<8x1xi32, #tpu.memory_space<vmem>>, vector<8x1xi32>
    %7 = arith.sitofp %6 : vector<8x1xi32> to vector<8x1xf32>
    %cst_5 = arith.constant 9.99999971E-10 : f32
    %8 = vector.broadcast %cst_5 : f32 to vector<8x1xf32>
    %9 = arith.addf %5, %8 : vector<8x1xf32>
    %10 = math.sqrt %9 : vector<8x1xf32>
    %cst_6 = arith.constant 1.000000e+00 : f32
    %11 = vector.broadcast %cst_6 : f32 to vector<8x1xf32>
    %12 = arith.subf %11, %10 : vector<8x1xf32>
    %cst_7 = arith.constant 0.000000e+00 : f32
    %13 = vector.broadcast %cst_7 : f32 to vector<8x1xf32>
    %14 = arith.maximumf %12, %13 : vector<8x1xf32>
    %15 = arith.mulf %7, %5 : vector<8x1xf32>
    %cst_8 = arith.constant 1.000000e+00 : f32
    %16 = vector.broadcast %cst_8 : f32 to vector<8x1xf32>
    %17 = arith.subf %16, %7 : vector<8x1xf32>
    %18 = arith.mulf %14, %14 : vector<8x1xf32>
    %19 = arith.mulf %17, %18 : vector<8x1xf32>
    %20 = arith.addf %15, %19 : vector<8x1xf32>
    %cst_9 = arith.constant 5.000000e-01 : f32
    %21 = vector.broadcast %cst_9 : f32 to vector<8x1xf32>
    %22 = arith.mulf %21, %20 : vector<8x1xf32>
    %c0_i32 = arith.constant 0 : i32
    %23 = arith.cmpi slt, %arg0, %c0_i32 : i32
    %24 = arith.extui %23 : i1 to i32
    %c0_i32_10 = arith.constant 0 : i32
    %25 = arith.cmpi ne, %24, %c0_i32_10 : i32
    scf.if %25 {
      %29 = vector.shape_cast %22 : vector<8x1xf32> to vector<1x8x1xf32>
      %cst_13 = arith.constant dense<0.000000e+00> : vector<1xf32>
      %30 = vector.multi_reduction <add>, %29, %cst_13 [1, 2] : vector<1x8x1xf32> to vector<1xf32>
      %31 = vector.shape_cast %30 : vector<1xf32> to vector<1x1x1xf32>
      %32 = vector.extract %31[0, 0, 0] : f32 from vector<1x1x1xf32>
      %33 = tpu.iota {dimensions = array<i32: 0>} : vector<8x128xi32>
      %34 = tpu.iota {dimensions = array<i32: 1>} : vector<8x128xi32>
      %35 = arith.addi %33, %34 : vector<8x128xi32>
      %c0_i32_14 = arith.constant 0 : i32
      %36 = vector.broadcast %c0_i32_14 : i32 to vector<8x128xi32>
      %37 = arith.cmpi eq, %35, %36 : vector<8x128xi32>
      %cst_15 = arith.constant 0.000000e+00 : f32
      %38 = vector.broadcast %32 : f32 to vector<8x128xf32>
      %39 = vector.broadcast %cst_15 : f32 to vector<8x128xf32>
      %40 = arith.select %37, %38, %39 : vector<8x128xi1>, vector<8x128xf32>
      %c0_16 = arith.constant 0 : index
      %c0_17 = arith.constant 0 : index
      %41 = vector.load %arg5[%c0_16, %c0_17] : memref<8x128xf32, #tpu.memory_space<vmem>>, vector<8x128xf32>
      tpu.vector_store %arg5[%c0_16, %c0_17], %40 {strides = array<i32>} : memref<8x128xf32, #tpu.memory_space<vmem>>, vector<8x128xf32>,
    } else {
    }
    %c0_i32_11 = arith.constant 0 : i32
    %26 = arith.cmpi eq, %arg0, %c0_i32_11 : i32
    %27 = arith.extui %26 : i1 to i32
    %c0_i32_12 = arith.constant 0 : i32
    %28 = arith.cmpi ne, %27, %c0_i32_12 : i32
    scf.if %28 {
      %29 = tpu.iota {dimensions = array<i32: 0>} : vector<8x1xi32>
      %c0_13 = arith.constant 0 : index
      %30 = memref.load %arg1[%c0_13] : memref<1xi32, #tpu.memory_space<smem>>
      %c8_i32 = arith.constant 8 : i32
      %31 = arith.muli %arg0, %c8_i32 : i32
      %32 = arith.subi %30, %31 : i32
      %33 = vector.broadcast %32 : i32 to vector<8x1xi32>
      %34 = arith.cmpi slt, %29, %33 : vector<8x1xi32>
      %cst_14 = arith.constant 0.000000e+00 : f32
      %35 = vector.broadcast %cst_14 : f32 to vector<8x1xf32>
      %36 = arith.select %34, %22, %35 : vector<8x1xi1>, vector<8x1xf32>
      %37 = vector.shape_cast %36 : vector<8x1xf32> to vector<1x8x1xf32>
      %cst_15 = arith.constant dense<0.000000e+00> : vector<1xf32>
      %38 = vector.multi_reduction <add>, %37, %cst_15 [1, 2] : vector<1x8x1xf32> to vector<1xf32>
      %39 = vector.shape_cast %38 : vector<1xf32> to vector<1x1x1xf32>
      %40 = vector.extract %39[0, 0, 0] : f32 from vector<1x1x1xf32>
      %41 = tpu.iota {dimensions = array<i32: 0>} : vector<8x128xi32>
      %42 = tpu.iota {dimensions = array<i32: 1>} : vector<8x128xi32>
      %43 = arith.addi %41, %42 : vector<8x128xi32>
      %c0_i32_16 = arith.constant 0 : i32
      %44 = vector.broadcast %c0_i32_16 : i32 to vector<8x128xi32>
      %45 = arith.cmpi eq, %43, %44 : vector<8x128xi32>
      %cst_17 = arith.constant 0.000000e+00 : f32
      %46 = vector.broadcast %40 : f32 to vector<8x128xf32>
      %47 = vector.broadcast %cst_17 : f32 to vector<8x128xf32>
      %48 = arith.select %45, %46, %47 : vector<8x128xi1>, vector<8x128xf32>
      %c0_18 = arith.constant 0 : index
      %c0_19 = arith.constant 0 : index
      %49 = vector.load %arg5[%c0_18, %c0_19] : memref<8x128xf32, #tpu.memory_space<vmem>>, vector<8x128xf32>
      tpu.vector_store %arg5[%c0_18, %c0_19], %48 {strides = array<i32>} : memref<8x128xf32, #tpu.memory_space<vmem>>, vector<8x128xf32>,
    } else {
    }
    return
  }
  func.func @transform_0(%arg0: i32) -> i32 {
    %c0_i32 = arith.constant 0 : i32
    %c0_i32_0 = arith.constant 0 : i32
    return %c0_i32 : i32
  }
  func.func @transform_1(%arg0: i32) -> (i32, i32) {
    %c0_i32 = arith.constant 0 : i32
    %c0_i32_0 = arith.constant 0 : i32
    return %arg0, %c0_i32 : i32, i32
  }
  func.func @transform_2(%arg0: i32) -> (i32, i32) {
    %c0_i32 = arith.constant 0 : i32
    %c0_i32_0 = arith.constant 0 : i32
    return %arg0, %c0_i32 : i32, i32
  }
  func.func @transform_3(%arg0: i32) -> (i32, i32) {
    %c0_i32 = arith.constant 0 : i32
    %c0_i32_0 = arith.constant 0 : i32
    return %arg0, %c0_i32 : i32, i32
  }
  func.func @transform_4(%arg0: i32) -> (i32, i32) {
    %c0_i32 = arith.constant 0 : i32
    %c0_i32_0 = arith.constant 0 : i32
    return %arg0, %c0_i32 : i32, i32
  }
}

</mosaic_0001>

<bundles_post_ra>
// kernel: tpu_custom_call.1
= control target key start
LH: loop header
LB: loop body
LE: loop exit
PB: predicated region body
PF: predicated region fallthrough
CT: control target
= control target key end

     0   :  { %s181_s0 = inlined_call_operand.<no memory space> [shape: s32[1], index: 0, kind: input, shape index: {}]   ;;  %s182_s1 = inlined_call_operand.vmem [shape: f32[2,32], index: 1, kind: input, shape index: {}]   ;;  %s183_s2 = inlined_call_operand.vmem [shape: f32[2,32], index: 2, kind: input, shape index: {}]   ;;  %s184_s3 = inlined_call_operand.vmem [shape: s32[2,1], index: 3, kind: input, shape index: {}]   ;;  %s185_s4 = inlined_call_operand.hbm [shape: f32[8,128], index: 4, kind: output, shape index: {}]  }
   0x1   :  { %v19_v0 = vld [vmem:[%s182_s1] sm:$0xff] }
   0x2   :  { %v20_v1 = vld [vmem:[%s183_s2] sm:$0xff] }
   0x3   :  { %v21_v2 = vsub.f32 %v20_v1, %v19_v0 }
   0x4   :  { %10 = vsyncpa [#allocation4], 0  ;;  %vm23_vm0 = vcmask 261120   ;;  %v27_v9 = vld [vmem:[%s184_s3] sm:$0xff]  ;;  %v73_v15 = vlaneseq  ;;  %v78_v22 = vstv %s181_s0  ;;  %vm81_vm4 = vcmask 7168   ;;  %s140_s3 = smov [#allocation3]  }
   0x5   :  { %v22_v3 = vmul.f32 %v21_v2, %v21_v2  ;;  %v28_v13 = vcvt.s32.f32 %v27_v9  ;;  %s105_s21 = sshll.u32 %s140_s3, 4  ;;  %s106_s21 = int_to_ptr.vmem [resolvable:$true] %s105_s21 }
   0x6   :  { %v74_v19 = vshrl.u32 %v73_v15, 7  ;;  %v93_v34 = vand.u32 127, %v73_v15  ;;  %s118_s22 = scalar_lea.vmem %s106_s21, 128  ;;  %p123_p1 = scmp.lt.s32.totalorder %s106_s21, %s106_s21 }
   0x7   :  { %v24_v4 = vsel %vm23_vm0, %v22_v3, 0.0  ;;  %v40_v16 = vsub.f32 1.0, %v28_v13  ;;  %p119_p0 = scmp.ne.s32.totalorder %s106_s21, %s118_s22  ;;  %p124_p2 = scmp.lt.s32.totalorder %s118_s22, %s118_s22 }
   0x8   :  { %25 = vadd.xlane.f32.xlu0 %v24_v4  ;;  %vm79_vm3 = vcmp.lt.s32.totalorder %v74_v19, %v78_v22  ;;  %v94_v35 = vadd.s32 %v93_v34, %v74_v19 }
   0x9   :  { %p125_p3 = por %p124_p2, %p123_p1 }
   0xa   :  { %vm95_vm5 = vcmp.eq.s32.totalorder %v94_v35, 0 }
   0xb   :  { %p126_p4 = pnand %p125_p3, %p119_p0 }
  0x91   :  { %v26_v5 = vpop.xlane.xlu0 %25 }
  0x92   :  { %v29_v6 = vadd.f32 1e-09, %v26_v5  ;;  %v39_v20 = vmul.f32 %v28_v13, %v26_v5 }
  0x94   :  { %116 = vrsqrt.f32 %v29_v6  ;;  %vm32_vm1 = vcmp.eq.f32.partialorder %v29_v6, inf  ;;  %v35_v10 = vand.u32 2147483648, %v29_v6  ;;  %vm34_vm2 = vcmp.eq.f32.partialorder %v29_v6, 0.0 }
  0xa1   :  { %v117_v7 = vpop.eup %116 }
  0xa2   :  { %v31_v8 = vmul.f32 %v117_v7, %v29_v6 }
  0xa4   :  { %v33_v11 = vsel %vm32_vm1, %v29_v6, %v31_v8 }
  0xa5   :  { %v36_v12 = vsel %vm34_vm2, %v35_v10, %v33_v11 }
  0xa6   :  { %v37_v14 = vsub.f32 1.0, %v36_v12 }
  0xa8   :  { %v38_v17 = vmax.f32 %v37_v14, 0.0 }
  0xaa   :  { %v41_v18 = vmul.f32 %v38_v17, %v38_v17 }
  0xac   :  { %v42_v21 = vmul.f32 %v41_v18, %v40_v16 }
  0xae   :  { %v43_v23 = vadd.f32 %v42_v21, %v39_v20 }
  0xb0   :  { %v44_v24 = vmul.f32 0.5, %v43_v23 }
  0xb2   :  { %v80_v25 = vsel %vm79_vm3, %v44_v24, 0.0 }
  0xb3   :  { %v82_v26 = vsel %vm81_vm4, %v80_v25, 0.0 }
  0xb4   :  { %83 = vadd.xlane.f32.xlu0 %v82_v26 }
 0x13d   :  { %v84_v27 = vpop.xlane.xlu0 %83 }
 0x13e   :  { %v85_v28 = vrot.slane %v84_v27, 4 }
 0x140   :  { %v86_v29 = vadd.f32 %v85_v28, %v84_v27 }
 0x142   :  { %v87_v30 = vrot.slane %v86_v29, 2 }
 0x144   :  { %v88_v31 = vadd.f32 %v87_v30, %v86_v29 }
 0x146   :  { %v89_v32 = vrot.slane %v88_v31, 1 }
 0x148   :  { %v90_v33 = vadd.f32 %v89_v32, %v88_v31 }
 0x14a   :  { %113 = vpush %v90_v33 }
 0x17b   :  { %s114_s0 = spop %113 }
 0x17c   :  { %v96_v36 = vstv %s114_s0 }
 0x17d   :  { %v97_v37 = vsel %vm95_vm5, %v96_v36, 0.0 }
 0x17e   :  { %98 = vst [vmem:[#allocation3] sm:$0xff] %v97_v37 }
 0x17f   :  { %129 = shalt.err (!%p126_p4)
}
 0x180   :  { %108 = dma.vmem_to_hbm [thread:$0]  %s106_s21, 128, %s185_s4, [#allocation4]  }
 0x181   :  { %138 = dma.done.wait [#allocation4], 128  }
 0x182   :  { %139 = vsyncadd [#allocation4], 4294967168 }
 0x183   :  { %112 = vsyncpa [#allocation4], 1 }

</bundles_post_ra>
